<compile_context>
chip_gen: v5e
topology: v5e:2x2
jax: 0.10.0
libtpu: 0.0.40
codegen_flags: <defaults>
</compile_context>

<pallas_src>
import functools

import jax
import jax.numpy as jnp
from jax.experimental import pallas as pl
from jax.experimental.pallas import tpu as pltpu


# Slab row indices.
_ROW_TGT_CLS = 0
_ROW_QMASK = 1
_ROW_PB = 2       # rows 2..5
_ROW_TB = 6       # rows 6..9
_ROW_PCUT = 10
_ROW_TCUT = 11
_ROW_BMASK = 12
_ROW_PSEQ = 13
_ROW_TSEQ = 14
_ROW_SMASK = 15
_NUM_ROWS = 16


def _round_up(x, m):
    return ((x + m - 1) // m) * m


# ----------------------------------------------------------------------------
# Pallas kernel: all five loss reductions in one pass
# ----------------------------------------------------------------------------
def _loss_kernel(logits_ref, slab_ref, out_ref, *,
                 num_classes: int, class_weights: tuple, fn_penalty: float):
    f32 = jnp.float32
    logits = logits_ref[...].astype(f32)        # [C, L]   lane-dense
    slab = slab_ref[...].astype(f32)            # [16, L]  lane-dense

    def row(r):
        return slab[r:r + 1, :]                 # [1, L]

    # ---------------- classification: weighted softmax cross-entropy -------
    # Unrolled over the (static, small) class dimension on the sublane axis:
    # pure full-lane VPU work, no cross-lane reduce per query.
    tgt_cls = row(_ROW_TGT_CLS)                 # [1, L] class index as f32
    qmask = row(_ROW_QMASK)                     # [1, L] 1.0 for real queries

    m = logits[0:1, :]
    for c in range(1, num_classes):
        m = jnp.maximum(m, logits[c:c + 1, :])
    s = jnp.exp(logits[0:1, :] - m)
    for c in range(1, num_classes):
        s = s + jnp.exp(logits[c:c + 1, :] - m)
    lse = m + jnp.log(s)                        # [1, L]

    picked = jnp.zeros_like(m)
    wt = jnp.zeros_like(m)
    for c in range(num_classes):
        is_c = tgt_cls == float(c)
        picked = jnp.where(is_c, logits[c:c + 1, :], picked)
        wt = jnp.where(is_c, class_weights[c], wt)
    wt = wt * qmask                             # padded lanes contribute 0
    ce = lse - picked
    # F.cross_entropy(weight=..., reduction='mean') = sum(w*ce) / sum(w)
    loss_class = jnp.sum(wt * ce) / jnp.maximum(jnp.sum(wt), 1e-12)

    # ---------------- matched boxes: validity mask & count -----------------
    bmask = row(_ROW_BMASK)
    n_boxes = jnp.maximum(jnp.sum(bmask), 1.0)

    pb = [row(_ROW_PB + i) for i in range(4)]   # pred x1,y1,x2,y2 : [1, L]
    tb = [row(_ROW_TB + i) for i in range(4)]   # tgt  x1,y1,x2,y2 : [1, L]

    # ---------------- bbox L1 (mean over all 4*M elements, raw boxes) ------
    l1 = (jnp.abs(pb[0] - tb[0]) + jnp.abs(pb[1] - tb[1]) +
          jnp.abs(pb[2] - tb[2]) + jnp.abs(pb[3] - tb[3]))
    loss_bbox = jnp.sum(l1 * bmask) / (n_boxes * 4.0)

    # ---------------- GIoU loss (diagonal of pairwise GIoU) ----------------
    def fix(x1, y1, x2, y2):
        # _validate_and_fix_boxes: clamp the whole box at 0 when degenerate.
        bad = jnp.logical_or(x1 > x2, y1 > y2)
        x1 = jnp.where(bad, jnp.maximum(x1, 0.0), x1)
        y1 = jnp.where(bad, jnp.maximum(y1, 0.0), y1)
        x2 = jnp.where(bad, jnp.maximum(x2, 0.0), x2)
        y2 = jnp.where(bad, jnp.maximum(y2, 0.0), y2)
        # _fix_invalid_boxes
        x2 = jnp.maximum(x2, x1 + 1e-6)
        y2 = jnp.maximum(y2, y1 + 1e-6)
        return x1, y1, x2, y2

    px1, py1, px2, py2 = fix(*pb)
    tx1, ty1, tx2, ty2 = fix(*tb)
    area_p = (px2 - px1) * (py2 - py1)
    area_t = (tx2 - tx1) * (ty2 - ty1)
    ix1 = jnp.maximum(px1, tx1)
    iy1 = jnp.maximum(py1, ty1)
    ix2 = jnp.minimum(px2, tx2)
    iy2 = jnp.minimum(py2, ty2)
    inter = jnp.maximum(ix2 - ix1, 0.0) * jnp.maximum(iy2 - iy1, 0.0)
    union = area_p + area_t - inter
    iou = inter * pl.reciprocal(union + 1e-7, approx=True)
    ex1 = jnp.minimum(px1, tx1)
    ey1 = jnp.minimum(py1, ty1)
    ex2 = jnp.maximum(px2, tx2)
    ey2 = jnp.maximum(py2, ty2)
    enc = jnp.maximum(ex2 - ex1, 0.0) * jnp.maximum(ey2 - ey1, 0.0)
    giou = iou - (enc - union) * pl.reciprocal(enc + 1e-7, approx=True)
    giou_l = jnp.maximum(1.0 - giou, 0.0)       # clamp(min=0) inside GIoULoss
    loss_giou = jnp.sum(giou_l * bmask) / n_boxes

    # ---------------- cutting: weighted BCE-with-logits --------------------
    x = row(_ROW_PCUT)
    t = row(_ROW_TCUT)
    e = jnp.exp(-jnp.abs(x))
    bce = jnp.maximum(x, 0.0) - x * t + jnp.log(1.0 + e)
    # sigmoid(x) < 0.5  <=>  x < 0 : skip the sigmoid entirely.
    fn_mask = jnp.logical_and(t == 1.0, x < 0.0)
    pw = jnp.where(fn_mask, fn_penalty, 1.0)
    loss_cutting = jnp.sum(bce * pw * bmask) / n_boxes

    # ---------------- sequence-level BCE-with-logits -----------------------
    xs = row(_ROW_PSEQ)
    ts = row(_ROW_TSEQ)
    smask = row(_ROW_SMASK)
    es = jnp.exp(-jnp.abs(xs))
    bce_s = jnp.maximum(xs, 0.0) - xs * ts + jnp.log(1.0 + es)
    n_seq = jnp.maximum(jnp.sum(smask), 1.0)
    loss_sequence = jnp.sum(bce_s * smask) / n_seq

    # ---------------- pack the 5 scalars into one lane-dense row -----------
    lane = jax.lax.broadcasted_iota(jnp.int32, out_ref.shape, 1)
    out = jnp.where(lane == 0, loss_class, 0.0)
    out = jnp.where(lane == 1, loss_bbox, out)
    out = jnp.where(lane == 2, loss_giou, out)
    out = jnp.where(lane == 3, loss_cutting, out)
    out = jnp.where(lane == 4, loss_sequence, out)
    out_ref[...] = out.astype(out_ref.dtype)


def _run_loss_kernel(logits_cl, slab, *, num_classes, class_weights, fn_penalty):
    kernel = functools.partial(
        _loss_kernel,
        num_classes=int(num_classes),
        class_weights=tuple(float(w) for w in class_weights),
        fn_penalty=float(fn_penalty))
    vmem = pl.BlockSpec(memory_space=pltpu.MemorySpace.VMEM)
    return pl.pallas_call(
        kernel,
        out_shape=jax.ShapeDtypeStruct((1, 128), jnp.float32),
        in_specs=[vmem, vmem],
        out_specs=vmem,
    )(logits_cl, slab)


# ----------------------------------------------------------------------------
# Wrapper reproducing CuttingDetectionLoss.forward
# ----------------------------------------------------------------------------
def cutting_detection_loss(outputs, targets, config=None):
    config = config or {}
    w_class = config.get('classification', 1.0)
    w_bbox = config.get('bbox_regression', 5.0)
    w_giou = config.get('giou', 2.0)
    w_cut = config.get('cutting', 3.0)
    w_seq = config.get('sequence', 2.0)
    fn_penalty = config.get('false_negative_penalty', 10.0)

    pred_logits = outputs['pred_logits']         # [B, Q, C]
    pred_boxes = outputs['pred_boxes']           # [B, Q, 4]
    pred_cutting = outputs['pred_cutting']       # [B, Q, 1]
    pred_sequence = outputs['sequence_cutting']  # [B, 1]
    B, Q, C = pred_logits.shape
    NQ = B * Q
    # Static lane width -> one compiled kernel irrespective of per-batch counts.
    L = _round_up(max(NQ, 128), 128)

    has_valid_targets = any(int(t['labels'].shape[0]) > 0 for t in targets)
    if not has_valid_targets:
        z = jnp.float32(0.0)
        return {'loss': z, 'loss_class': z, 'loss_bbox': z, 'loss_giou': z,
                'loss_cutting': z, 'loss_sequence': z}

    # Deterministic identity matching (see TODO(synk) above): query j of batch
    # i is matched to target j of batch i for j < n_i.
    flat_idx, labels_list, tgt_box_list, tgt_cut_list = [], [], [], []
    for i, t in enumerate(targets):
        n = int(t['labels'].shape[0])
        if n > 0:
            flat_idx.extend(range(i * Q, i * Q + n))
            labels_list.append(jnp.asarray(t['labels']).astype(jnp.float32))
            tgt_box_list.append(jnp.asarray(t['boxes']).astype(jnp.float32))
            cut = t.get('cutting', None)
            if cut is None:
                cut = jnp.zeros((n,), jnp.float32)
            tgt_cut_list.append(jnp.asarray(cut).astype(jnp.float32))
    M = len(flat_idx)
    idx = jnp.asarray(flat_idx, jnp.int32)
    labels_f = jnp.concatenate(labels_list)                   # [M]
    tgt_boxes = jnp.concatenate(tgt_box_list, axis=0)         # [M, 4]
    tgt_cut = jnp.concatenate(tgt_cut_list)                   # [M]

    src_boxes = jnp.take(pred_boxes.reshape(NQ, 4), idx, axis=0)     # [M, 4]
    src_cut = jnp.take(pred_cutting.reshape(NQ), idx)                # [M]
    tgt_cls_row = jnp.zeros((NQ,), jnp.float32).at[idx].set(labels_f)
    tgt_seq = jnp.asarray(
        [float(t.get('has_cutting', False)) for t in targets], jnp.float32)

    def pad_row(v):
        v = jnp.asarray(v, jnp.float32).reshape(-1)
        return jnp.pad(v, (0, L - v.shape[0]))

    rows = [
        pad_row(tgt_cls_row),                      # 0  target classes
        pad_row(jnp.ones((NQ,), jnp.float32)),     # 1  query mask
        pad_row(src_boxes[:, 0]),                  # 2  pred x1
        pad_row(src_boxes[:, 1]),                  # 3  pred y1
        pad_row(src_boxes[:, 2]),                  # 4  pred x2
        pad_row(src_boxes[:, 3]),                  # 5  pred y2
        pad_row(tgt_boxes[:, 0]),                  # 6  tgt x1
        pad_row(tgt_boxes[:, 1]),                  # 7  tgt y1
        pad_row(tgt_boxes[:, 2]),                  # 8  tgt x2
        pad_row(tgt_boxes[:, 3]),                  # 9  tgt y2
        pad_row(src_cut),                          # 10 pred cutting logits
        pad_row(tgt_cut),                          # 11 tgt cutting labels
        pad_row(jnp.ones((M,), jnp.float32)),      # 12 box mask
        pad_row(pred_sequence.reshape(-1)),        # 13 seq logits
        pad_row(tgt_seq),                          # 14 seq targets
        pad_row(jnp.ones((B,), jnp.float32)),      # 15 seq mask
    ]
    slab = jnp.stack(rows, axis=0)                 # [16, L] f32

    # Logits stay in native dtype (kernel casts to f32), queries on lanes.
    logits_cl = jnp.transpose(pred_logits.reshape(NQ, C))     # [C, NQ]
    logits_cl = jnp.pad(logits_cl, ((0, 0), (0, L - NQ)))     # [C, L]

    # class_weights buffer from the module: [0.1, 1.0, 1.0, ...].
    class_weights = [0.1] + [1.0] * (C - 1)

    out = _run_loss_kernel(logits_cl, slab, num_classes=C,
                           class_weights=class_weights, fn_penalty=fn_penalty)

    loss_class = jnp.maximum(out[0, 0], 0.0)
    loss_bbox = jnp.maximum(out[0, 1], 0.0)
    loss_giou = jnp.maximum(out[0, 2], 0.0)
    loss_cutting = jnp.maximum(out[0, 3], 0.0)
    loss_sequence = jnp.maximum(out[0, 4], 0.0)

    total = (w_class * loss_class + w_bbox * loss_bbox + w_giou * loss_giou
             + w_cut * loss_cutting + w_seq * loss_sequence)
    return {'loss': total, 'loss_class': loss_class, 'loss_bbox': loss_bbox,
            'loss_giou': loss_giou, 'loss_cutting': loss_cutting,
            'loss_sequence': loss_sequence}


# ----------------------------------------------------------------------------
# Demo
# ----------------------------------------------------------------------------
if __name__ == "__main__":
    key = jax.random.PRNGKey(0)
    B, Q, C = 2, 8, 4
    keys = jax.random.split(key, 12)

    outputs = {
        'pred_logits': jax.random.normal(keys[0], (B, Q, C), jnp.float32),
        'pred_boxes': jax.random.uniform(keys[1], (B, Q, 4), jnp.float32),
        'pred_cutting': jax.random.normal(keys[2], (B, Q, 1), jnp.float32),
        'sequence_cutting': jax.random.normal(keys[3], (B, 1), jnp.float32),
    }

    targets = []
    n_per_batch = [3, 2]
    for i in range(B):
        n = n_per_batch[i]
        kl, kxy, kwh, kc = jax.random.split(keys[4 + i], 4)
        labels = jax.random.randint(kl, (n,), 1, C)
        xy = jax.random.uniform(kxy, (n, 2), minval=0.0, maxval=0.5)
        wh = jax.random.uniform(kwh, (n, 2), minval=0.05, maxval=0.4)
        boxes = jnp.concatenate([xy, xy + wh], axis=-1)
        cutting = (jax.random.uniform(kc, (n,)) > 0.5).astype(jnp.float32)
        targets.append({'labels': labels, 'boxes': boxes, 'cutting': cutting,
                        'has_cutting': bool(i == 0)})

    losses = cutting_detection_loss(outputs, targets, config={})
    jax.block_until_ready(losses['loss'])
    print("KERNEL_OK")
</pallas_src>

<mosaic_0001>
module attributes {stable_mosaic.version = 11 : i64} {
  func.func @_loss_kernel(%arg0: memref<4x128xf32, #tpu.memory_space<vmem>>, %arg1: memref<16x128xf32, #tpu.memory_space<vmem>>, %arg2: memref<1x128xf32, #tpu.memory_space<vmem>>) attributes {dimension_semantics = [], scalar_prefetch = 0 : i64, scratch_operands = 0 : i64, tpu.core_type = #tpu.core_type<tc>} {
    %c0 = arith.constant 0 : index
    %c0_0 = arith.constant 0 : index
    %0 = vector.load %arg0[%c0, %c0_0] : memref<4x128xf32, #tpu.memory_space<vmem>>, vector<4x128xf32>
    %c0_1 = arith.constant 0 : index
    %c0_2 = arith.constant 0 : index
    %1 = vector.load %arg1[%c0_1, %c0_2] : memref<16x128xf32, #tpu.memory_space<vmem>>, vector<16x128xf32>
    %2 = vector.extract_strided_slice %1 {offsets = [0, 0], sizes = [1, 128], strides = [1, 1]} : vector<16x128xf32> to vector<1x128xf32>
    %3 = vector.extract_strided_slice %1 {offsets = [1, 0], sizes = [1, 128], strides = [1, 1]} : vector<16x128xf32> to vector<1x128xf32>
    %4 = vector.extract_strided_slice %0 {offsets = [0, 0], sizes = [1, 128], strides = [1, 1]} : vector<4x128xf32> to vector<1x128xf32>
    %5 = vector.extract_strided_slice %0 {offsets = [1, 0], sizes = [1, 128], strides = [1, 1]} : vector<4x128xf32> to vector<1x128xf32>
    %6 = arith.maximumf %4, %5 : vector<1x128xf32>
    %7 = vector.extract_strided_slice %0 {offsets = [2, 0], sizes = [1, 128], strides = [1, 1]} : vector<4x128xf32> to vector<1x128xf32>
    %8 = arith.maximumf %6, %7 : vector<1x128xf32>
    %9 = vector.extract_strided_slice %0 {offsets = [3, 0], sizes = [1, 128], strides = [1, 1]} : vector<4x128xf32> to vector<1x128xf32>
    %10 = arith.maximumf %8, %9 : vector<1x128xf32>
    %11 = vector.extract_strided_slice %0 {offsets = [0, 0], sizes = [1, 128], strides = [1, 1]} : vector<4x128xf32> to vector<1x128xf32>
    %12 = arith.subf %11, %10 : vector<1x128xf32>
    %13 = math.exp %12 : vector<1x128xf32>
    %14 = vector.extract_strided_slice %0 {offsets = [1, 0], sizes = [1, 128], strides = [1, 1]} : vector<4x128xf32> to vector<1x128xf32>
    %15 = arith.subf %14, %10 : vector<1x128xf32>
    %16 = math.exp %15 : vector<1x128xf32>
    %17 = arith.addf %13, %16 : vector<1x128xf32>
    %18 = vector.extract_strided_slice %0 {offsets = [2, 0], sizes = [1, 128], strides = [1, 1]} : vector<4x128xf32> to vector<1x128xf32>
    %19 = arith.subf %18, %10 : vector<1x128xf32>
    %20 = math.exp %19 : vector<1x128xf32>
    %21 = arith.addf %17, %20 : vector<1x128xf32>
    %22 = vector.extract_strided_slice %0 {offsets = [3, 0], sizes = [1, 128], strides = [1, 1]} : vector<4x128xf32> to vector<1x128xf32>
    %23 = arith.subf %22, %10 : vector<1x128xf32>
    %24 = math.exp %23 : vector<1x128xf32>
    %25 = arith.addf %21, %24 : vector<1x128xf32>
    %26 = math.log %25 : vector<1x128xf32>
    %27 = arith.addf %10, %26 : vector<1x128xf32>
    %cst = arith.constant 0.000000e+00 : f32
    %28 = vector.broadcast %cst : f32 to vector<1x128xf32>
    %cst_3 = arith.constant 0.000000e+00 : f32
    %29 = vector.broadcast %cst_3 : f32 to vector<1x128xf32>
    %cst_4 = arith.constant 0.000000e+00 : f32
    %30 = vector.broadcast %cst_4 : f32 to vector<1x128xf32>
    %31 = arith.cmpf oeq, %2, %30 : vector<1x128xf32>
    %32 = vector.extract_strided_slice %0 {offsets = [0, 0], sizes = [1, 128], strides = [1, 1]} : vector<4x128xf32> to vector<1x128xf32>
    %33 = arith.select %31, %32, %28 : vector<1x128xi1>, vector<1x128xf32>
    %cst_5 = arith.constant 1.000000e-01 : f32
    %34 = vector.broadcast %cst_5 : f32 to vector<1x128xf32>
    %35 = arith.select %31, %34, %29 : vector<1x128xi1>, vector<1x128xf32>
    %cst_6 = arith.constant 1.000000e+00 : f32
    %36 = vector.broadcast %cst_6 : f32 to vector<1x128xf32>
    %37 = arith.cmpf oeq, %2, %36 : vector<1x128xf32>
    %38 = vector.extract_strided_slice %0 {offsets = [1, 0], sizes = [1, 128], strides = [1, 1]} : vector<4x128xf32> to vector<1x128xf32>
    %39 = arith.select %37, %38, %33 : vector<1x128xi1>, vector<1x128xf32>
    %cst_7 = arith.constant 1.000000e+00 : f32
    %40 = vector.broadcast %cst_7 : f32 to vector<1x128xf32>
    %41 = arith.select %37, %40, %35 : vector<1x128xi1>, vector<1x128xf32>
    %cst_8 = arith.constant 2.000000e+00 : f32
    %42 = vector.broadcast %cst_8 : f32 to vector<1x128xf32>
    %43 = arith.cmpf oeq, %2, %42 : vector<1x128xf32>
    %44 = vector.extract_strided_slice %0 {offsets = [2, 0], sizes = [1, 128], strides = [1, 1]} : vector<4x128xf32> to vector<1x128xf32>
    %45 = arith.select %43, %44, %39 : vector<1x128xi1>, vector<1x128xf32>
    %cst_9 = arith.constant 1.000000e+00 : f32
    %46 = vector.broadcast %cst_9 : f32 to vector<1x128xf32>
    %47 = arith.select %43, %46, %41 : vector<1x128xi1>, vector<1x128xf32>
    %cst_10 = arith.constant 3.000000e+00 : f32
    %48 = vector.broadcast %cst_10 : f32 to vector<1x128xf32>
    %49 = arith.cmpf oeq, %2, %48 : vector<1x128xf32>
    %50 = vector.extract_strided_slice %0 {offsets = [3, 0], sizes = [1, 128], strides = [1, 1]} : vector<4x128xf32> to vector<1x128xf32>
    %51 = arith.select %49, %50, %45 : vector<1x128xi1>, vector<1x128xf32>
    %cst_11 = arith.constant 1.000000e+00 : f32
    %52 = vector.broadcast %cst_11 : f32 to vector<1x128xf32>
    %53 = arith.select %49, %52, %47 : vector<1x128xi1>, vector<1x128xf32>
    %54 = arith.mulf %53, %3 : vector<1x128xf32>
    %55 = arith.subf %27, %51 : vector<1x128xf32>
    %56 = arith.mulf %54, %55 : vector<1x128xf32>
    %57 = vector.shape_cast %56 : vector<1x128xf32> to vector<1x1x128xf32>
    %cst_12 = arith.constant dense<0.000000e+00> : vector<1xf32>
    %58 = vector.multi_reduction <add>, %57, %cst_12 [1, 2] : vector<1x1x128xf32> to vector<1xf32>
    %59 = vector.shape_cast %58 : vector<1xf32> to vector<1x1x1xf32>
    %60 = vector.extract %59[0, 0, 0] : f32 from vector<1x1x1xf32>
    %61 = vector.shape_cast %54 : vector<1x128xf32> to vector<1x1x128xf32>
    %cst_13 = arith.constant dense<0.000000e+00> : vector<1xf32>
    %62 = vector.multi_reduction <add>, %61, %cst_13 [1, 2] : vector<1x1x128xf32> to vector<1xf32>
    %63 = vector.shape_cast %62 : vector<1xf32> to vector<1x1x1xf32>
    %64 = vector.extract %63[0, 0, 0] : f32 from vector<1x1x1xf32>
    %cst_14 = arith.constant 9.99999996E-13 : f32
    %65 = arith.maximumf %64, %cst_14 : f32
    %66 = arith.divf %60, %65 : f32
    %67 = vector.extract_strided_slice %1 {offsets = [12, 0], sizes = [1, 128], strides = [1, 1]} : vector<16x128xf32> to vector<1x128xf32>
    %68 = vector.shape_cast %67 : vector<1x128xf32> to vector<1x1x128xf32>
    %cst_15 = arith.constant dense<0.000000e+00> : vector<1xf32>
    %69 = vector.multi_reduction <add>, %68, %cst_15 [1, 2] : vector<1x1x128xf32> to vector<1xf32>
    %70 = vector.shape_cast %69 : vector<1xf32> to vector<1x1x1xf32>
    %71 = vector.extract %70[0, 0, 0] : f32 from vector<1x1x1xf32>
    %cst_16 = arith.constant 1.000000e+00 : f32
    %72 = arith.maximumf %71, %cst_16 : f32
    %73 = vector.extract_strided_slice %1 {offsets = [2, 0], sizes = [1, 128], strides = [1, 1]} : vector<16x128xf32> to vector<1x128xf32>
    %74 = vector.extract_strided_slice %1 {offsets = [3, 0], sizes = [1, 128], strides = [1, 1]} : vector<16x128xf32> to vector<1x128xf32>
    %75 = vector.extract_strided_slice %1 {offsets = [4, 0], sizes = [1, 128], strides = [1, 1]} : vector<16x128xf32> to vector<1x128xf32>
    %76 = vector.extract_strided_slice %1 {offsets = [5, 0], sizes = [1, 128], strides = [1, 1]} : vector<16x128xf32> to vector<1x128xf32>
    %77 = vector.extract_strided_slice %1 {offsets = [6, 0], sizes = [1, 128], strides = [1, 1]} : vector<16x128xf32> to vector<1x128xf32>
    %78 = vector.extract_strided_slice %1 {offsets = [7, 0], sizes = [1, 128], strides = [1, 1]} : vector<16x128xf32> to vector<1x128xf32>
    %79 = vector.extract_strided_slice %1 {offsets = [8, 0], sizes = [1, 128], strides = [1, 1]} : vector<16x128xf32> to vector<1x128xf32>
    %80 = vector.extract_strided_slice %1 {offsets = [9, 0], sizes = [1, 128], strides = [1, 1]} : vector<16x128xf32> to vector<1x128xf32>
    %81 = arith.subf %73, %77 : vector<1x128xf32>
    %82 = math.absf %81 : vector<1x128xf32>
    %83 = arith.subf %74, %78 : vector<1x128xf32>
    %84 = math.absf %83 : vector<1x128xf32>
    %85 = arith.addf %82, %84 : vector<1x128xf32>
    %86 = arith.subf %75, %79 : vector<1x128xf32>
    %87 = math.absf %86 : vector<1x128xf32>
    %88 = arith.addf %85, %87 : vector<1x128xf32>
    %89 = arith.subf %76, %80 : vector<1x128xf32>
    %90 = math.absf %89 : vector<1x128xf32>
    %91 = arith.addf %88, %90 : vector<1x128xf32>
    %92 = arith.mulf %91, %67 : vector<1x128xf32>
    %93 = vector.shape_cast %92 : vector<1x128xf32> to vector<1x1x128xf32>
    %cst_17 = arith.constant dense<0.000000e+00> : vector<1xf32>
    %94 = vector.multi_reduction <add>, %93, %cst_17 [1, 2] : vector<1x1x128xf32> to vector<1xf32>
    %95 = vector.shape_cast %94 : vector<1xf32> to vector<1x1x1xf32>
    %96 = vector.extract %95[0, 0, 0] : f32 from vector<1x1x1xf32>
    %cst_18 = arith.constant 4.000000e+00 : f32
    %97 = arith.mulf %72, %cst_18 : f32
    %98 = arith.divf %96, %97 : f32
    %99 = arith.cmpf ogt, %73, %75 : vector<1x128xf32>
    %100 = arith.cmpf ogt, %74, %76 : vector<1x128xf32>
    %101 = arith.ori %99, %100 : vector<1x128xi1>
    %cst_19 = arith.constant 0.000000e+00 : f32
    %102 = vector.broadcast %cst_19 : f32 to vector<1x128xf32>
    %103 = arith.maximumf %73, %102 : vector<1x128xf32>
    %104 = arith.select %101, %103, %73 : vector<1x128xi1>, vector<1x128xf32>
    %cst_20 = arith.constant 0.000000e+00 : f32
    %105 = vector.broadcast %cst_20 : f32 to vector<1x128xf32>
    %106 = arith.maximumf %74, %105 : vector<1x128xf32>
    %107 = arith.select %101, %106, %74 : vector<1x128xi1>, vector<1x128xf32>
    %cst_21 = arith.constant 0.000000e+00 : f32
    %108 = vector.broadcast %cst_21 : f32 to vector<1x128xf32>
    %109 = arith.maximumf %75, %108 : vector<1x128xf32>
    %110 = arith.select %101, %109, %75 : vector<1x128xi1>, vector<1x128xf32>
    %cst_22 = arith.constant 0.000000e+00 : f32
    %111 = vector.broadcast %cst_22 : f32 to vector<1x128xf32>
    %112 = arith.maximumf %76, %111 : vector<1x128xf32>
    %113 = arith.select %101, %112, %76 : vector<1x128xi1>, vector<1x128xf32>
    %cst_23 = arith.constant 9.99999997E-7 : f32
    %114 = vector.broadcast %cst_23 : f32 to vector<1x128xf32>
    %115 = arith.addf %104, %114 : vector<1x128xf32>
    %116 = arith.maximumf %110, %115 : vector<1x128xf32>
    %cst_24 = arith.constant 9.99999997E-7 : f32
    %117 = vector.broadcast %cst_24 : f32 to vector<1x128xf32>
    %118 = arith.addf %107, %117 : vector<1x128xf32>
    %119 = arith.maximumf %113, %118 : vector<1x128xf32>
    %120 = arith.cmpf ogt, %77, %79 : vector<1x128xf32>
    %121 = arith.cmpf ogt, %78, %80 : vector<1x128xf32>
    %122 = arith.ori %120, %121 : vector<1x128xi1>
    %cst_25 = arith.constant 0.000000e+00 : f32
    %123 = vector.broadcast %cst_25 : f32 to vector<1x128xf32>
    %124 = arith.maximumf %77, %123 : vector<1x128xf32>
    %125 = arith.select %122, %124, %77 : vector<1x128xi1>, vector<1x128xf32>
    %cst_26 = arith.constant 0.000000e+00 : f32
    %126 = vector.broadcast %cst_26 : f32 to vector<1x128xf32>
    %127 = arith.maximumf %78, %126 : vector<1x128xf32>
    %128 = arith.select %122, %127, %78 : vector<1x128xi1>, vector<1x128xf32>
    %cst_27 = arith.constant 0.000000e+00 : f32
    %129 = vector.broadcast %cst_27 : f32 to vector<1x128xf32>
    %130 = arith.maximumf %79, %129 : vector<1x128xf32>
    %131 = arith.select %122, %130, %79 : vector<1x128xi1>, vector<1x128xf32>
    %cst_28 = arith.constant 0.000000e+00 : f32
    %132 = vector.broadcast %cst_28 : f32 to vector<1x128xf32>
    %133 = arith.maximumf %80, %132 : vector<1x128xf32>
    %134 = arith.select %122, %133, %80 : vector<1x128xi1>, vector<1x128xf32>
    %cst_29 = arith.constant 9.99999997E-7 : f32
    %135 = vector.broadcast %cst_29 : f32 to vector<1x128xf32>
    %136 = arith.addf %125, %135 : vector<1x128xf32>
    %137 = arith.maximumf %131, %136 : vector<1x128xf32>
    %cst_30 = arith.constant 9.99999997E-7 : f32
    %138 = vector.broadcast %cst_30 : f32 to vector<1x128xf32>
    %139 = arith.addf %128, %138 : vector<1x128xf32>
    %140 = arith.maximumf %134, %139 : vector<1x128xf32>
    %141 = arith.subf %116, %104 : vector<1x128xf32>
    %142 = arith.subf %119, %107 : vector<1x128xf32>
    %143 = arith.mulf %141, %142 : vector<1x128xf32>
    %144 = arith.subf %137, %125 : vector<1x128xf32>
    %145 = arith.subf %140, %128 : vector<1x128xf32>
    %146 = arith.mulf %144, %145 : vector<1x128xf32>
    %147 = arith.maximumf %104, %125 : vector<1x128xf32>
    %148 = arith.maximumf %107, %128 : vector<1x128xf32>
    %149 = arith.minimumf %116, %137 : vector<1x128xf32>
    %150 = arith.minimumf %119, %140 : vector<1x128xf32>
    %151 = arith.subf %149, %147 : vector<1x128xf32>
    %cst_31 = arith.constant 0.000000e+00 : f32
    %152 = vector.broadcast %cst_31 : f32 to vector<1x128xf32>
    %153 = arith.maximumf %151, %152 : vector<1x128xf32>
    %154 = arith.subf %150, %148 : vector<1x128xf32>
    %cst_32 = arith.constant 0.000000e+00 : f32
    %155 = vector.broadcast %cst_32 : f32 to vector<1x128xf32>
    %156 = arith.maximumf %154, %155 : vector<1x128xf32>
    %157 = arith.mulf %153, %156 : vector<1x128xf32>
    %158 = arith.addf %143, %146 : vector<1x128xf32>
    %159 = arith.subf %158, %157 : vector<1x128xf32>
    %cst_33 = arith.constant 1.000000e-07 : f32
    %160 = vector.broadcast %cst_33 : f32 to vector<1x128xf32>
    %161 = arith.addf %159, %160 : vector<1x128xf32>
    %162 = tpu.reciprocal %161 {approx = true} : vector<1x128xf32> -> vector<1x128xf32>
    %163 = arith.mulf %157, %162 : vector<1x128xf32>
    %164 = arith.minimumf %104, %125 : vector<1x128xf32>
    %165 = arith.minimumf %107, %128 : vector<1x128xf32>
    %166 = arith.maximumf %116, %137 : vector<1x128xf32>
    %167 = arith.maximumf %119, %140 : vector<1x128xf32>
    %168 = arith.subf %166, %164 : vector<1x128xf32>
    %cst_34 = arith.constant 0.000000e+00 : f32
    %169 = vector.broadcast %cst_34 : f32 to vector<1x128xf32>
    %170 = arith.maximumf %168, %169 : vector<1x128xf32>
    %171 = arith.subf %167, %165 : vector<1x128xf32>
    %cst_35 = arith.constant 0.000000e+00 : f32
    %172 = vector.broadcast %cst_35 : f32 to vector<1x128xf32>
    %173 = arith.maximumf %171, %172 : vector<1x128xf32>
    %174 = arith.mulf %170, %173 : vector<1x128xf32>
    %175 = arith.subf %174, %159 : vector<1x128xf32>
    %cst_36 = arith.constant 1.000000e-07 : f32
    %176 = vector.broadcast %cst_36 : f32 to vector<1x128xf32>
    %177 = arith.addf %174, %176 : vector<1x128xf32>
    %178 = tpu.reciprocal %177 {approx = true} : vector<1x128xf32> -> vector<1x128xf32>
    %179 = arith.mulf %175, %178 : vector<1x128xf32>
    %180 = arith.subf %163, %179 : vector<1x128xf32>
    %cst_37 = arith.constant 1.000000e+00 : f32
    %181 = vector.broadcast %cst_37 : f32 to vector<1x128xf32>
    %182 = arith.subf %181, %180 : vector<1x128xf32>
    %cst_38 = arith.constant 0.000000e+00 : f32
    %183 = vector.broadcast %cst_38 : f32 to vector<1x128xf32>
    %184 = arith.maximumf %182, %183 : vector<1x128xf32>
    %185 = arith.mulf %184, %67 : vector<1x128xf32>
    %186 = vector.shape_cast %185 : vector<1x128xf32> to vector<1x1x128xf32>
    %cst_39 = arith.constant dense<0.000000e+00> : vector<1xf32>
    %187 = vector.multi_reduction <add>, %186, %cst_39 [1, 2] : vector<1x1x128xf32> to vector<1xf32>
    %188 = vector.shape_cast %187 : vector<1xf32> to vector<1x1x1xf32>
    %189 = vector.extract %188[0, 0, 0] : f32 from vector<1x1x1xf32>
    %190 = arith.divf %189, %72 : f32
    %191 = vector.extract_strided_slice %1 {offsets = [10, 0], sizes = [1, 128], strides = [1, 1]} : vector<16x128xf32> to vector<1x128xf32>
    %192 = vector.extract_strided_slice %1 {offsets = [11, 0], sizes = [1, 128], strides = [1, 1]} : vector<16x128xf32> to vector<1x128xf32>
    %193 = math.absf %191 : vector<1x128xf32>
    %cst_40 = arith.constant 0.000000e+00 : f32
    %194 = vector.broadcast %cst_40 : f32 to vector<1x128xf32>
    %195 = arith.subf %194, %193 : vector<1x128xf32>
    %196 = math.exp %195 : vector<1x128xf32>
    %cst_41 = arith.constant 0.000000e+00 : f32
    %197 = vector.broadcast %cst_41 : f32 to vector<1x128xf32>
    %198 = arith.maximumf %191, %197 : vector<1x128xf32>
    %199 = arith.mulf %191, %192 : vector<1x128xf32>
    %200 = arith.subf %198, %199 : vector<1x128xf32>
    %cst_42 = arith.constant 1.000000e+00 : f32
    %201 = vector.broadcast %cst_42 : f32 to vector<1x128xf32>
    %202 = arith.addf %201, %196 : vector<1x128xf32>
    %203 = math.log %202 : vector<1x128xf32>
    %204 = arith.addf %200, %203 : vector<1x128xf32>
    %cst_43 = arith.constant 1.000000e+00 : f32
    %205 = vector.broadcast %cst_43 : f32 to vector<1x128xf32>
    %206 = arith.cmpf oeq, %192, %205 : vector<1x128xf32>
    %cst_44 = arith.constant 0.000000e+00 : f32
    %207 = vector.broadcast %cst_44 : f32 to vector<1x128xf32>
    %208 = arith.cmpf olt, %191, %207 : vector<1x128xf32>
    %209 = arith.andi %206, %208 : vector<1x128xi1>
    %cst_45 = arith.constant 1.000000e+01 : f32
    %cst_46 = arith.constant 1.000000e+00 : f32
    %210 = vector.broadcast %cst_45 : f32 to vector<1x128xf32>
    %211 = vector.broadcast %cst_46 : f32 to vector<1x128xf32>
    %212 = arith.select %209, %210, %211 : vector<1x128xi1>, vector<1x128xf32>
    %213 = arith.mulf %204, %212 : vector<1x128xf32>
    %214 = arith.mulf %213, %67 : vector<1x128xf32>
    %215 = vector.shape_cast %214 : vector<1x128xf32> to vector<1x1x128xf32>
    %cst_47 = arith.constant dense<0.000000e+00> : vector<1xf32>
    %216 = vector.multi_reduction <add>, %215, %cst_47 [1, 2] : vector<1x1x128xf32> to vector<1xf32>
    %217 = vector.shape_cast %216 : vector<1xf32> to vector<1x1x1xf32>
    %218 = vector.extract %217[0, 0, 0] : f32 from vector<1x1x1xf32>
    %219 = arith.divf %218, %72 : f32
    %220 = vector.extract_strided_slice %1 {offsets = [13, 0], sizes = [1, 128], strides = [1, 1]} : vector<16x128xf32> to vector<1x128xf32>
    %221 = vector.extract_strided_slice %1 {offsets = [14, 0], sizes = [1, 128], strides = [1, 1]} : vector<16x128xf32> to vector<1x128xf32>
    %222 = vector.extract_strided_slice %1 {offsets = [15, 0], sizes = [1, 128], strides = [1, 1]} : vector<16x128xf32> to vector<1x128xf32>
    %223 = math.absf %220 : vector<1x128xf32>
    %cst_48 = arith.constant 0.000000e+00 : f32
    %224 = vector.broadcast %cst_48 : f32 to vector<1x128xf32>
    %225 = arith.subf %224, %223 : vector<1x128xf32>
    %226 = math.exp %225 : vector<1x128xf32>
    %cst_49 = arith.constant 0.000000e+00 : f32
    %227 = vector.broadcast %cst_49 : f32 to vector<1x128xf32>
    %228 = arith.maximumf %220, %227 : vector<1x128xf32>
    %229 = arith.mulf %220, %221 : vector<1x128xf32>
    %230 = arith.subf %228, %229 : vector<1x128xf32>
    %cst_50 = arith.constant 1.000000e+00 : f32
    %231 = vector.broadcast %cst_50 : f32 to vector<1x128xf32>
    %232 = arith.addf %231, %226 : vector<1x128xf32>
    %233 = math.log %232 : vector<1x128xf32>
    %234 = arith.addf %230, %233 : vector<1x128xf32>
    %235 = vector.shape_cast %222 : vector<1x128xf32> to vector<1x1x128xf32>
    %cst_51 = arith.constant dense<0.000000e+00> : vector<1xf32>
    %236 = vector.multi_reduction <add>, %235, %cst_51 [1, 2] : vector<1x1x128xf32> to vector<1xf32>
    %237 = vector.shape_cast %236 : vector<1xf32> to vector<1x1x1xf32>
    %238 = vector.extract %237[0, 0, 0] : f32 from vector<1x1x1xf32>
    %cst_52 = arith.constant 1.000000e+00 : f32
    %239 = arith.maximumf %238, %cst_52 : f32
    %240 = arith.mulf %234, %222 : vector<1x128xf32>
    %241 = vector.shape_cast %240 : vector<1x128xf32> to vector<1x1x128xf32>
    %cst_53 = arith.constant dense<0.000000e+00> : vector<1xf32>
    %242 = vector.multi_reduction <add>, %241, %cst_53 [1, 2] : vector<1x1x128xf32> to vector<1xf32>
    %243 = vector.shape_cast %242 : vector<1xf32> to vector<1x1x1xf32>
    %244 = vector.extract %243[0, 0, 0] : f32 from vector<1x1x1xf32>
    %245 = arith.divf %244, %239 : f32
    %246 = tpu.iota {dimensions = array<i32: 1>} : vector<1x128xi32>
    %c0_i32 = arith.constant 0 : i32
    %247 = vector.broadcast %c0_i32 : i32 to vector<1x128xi32>
    %248 = arith.cmpi eq, %246, %247 : vector<1x128xi32>
    %cst_54 = arith.constant 0.000000e+00 : f32
    %249 = vector.broadcast %66 : f32 to vector<1x128xf32>
    %250 = vector.broadcast %cst_54 : f32 to vector<1x128xf32>
    %251 = arith.select %248, %249, %250 : vector<1x128xi1>, vector<1x128xf32>
    %c1_i32 = arith.constant 1 : i32
    %252 = vector.broadcast %c1_i32 : i32 to vector<1x128xi32>
    %253 = arith.cmpi eq, %246, %252 : vector<1x128xi32>
    %254 = vector.broadcast %98 : f32 to vector<1x128xf32>
    %255 = arith.select %253, %254, %251 : vector<1x128xi1>, vector<1x128xf32>
    %c2_i32 = arith.constant 2 : i32
    %256 = vector.broadcast %c2_i32 : i32 to vector<1x128xi32>
    %257 = arith.cmpi eq, %246, %256 : vector<1x128xi32>
    %258 = vector.broadcast %190 : f32 to vector<1x128xf32>
    %259 = arith.select %257, %258, %255 : vector<1x128xi1>, vector<1x128xf32>
    %c3_i32 = arith.constant 3 : i32
    %260 = vector.broadcast %c3_i32 : i32 to vector<1x128xi32>
    %261 = arith.cmpi eq, %246, %260 : vector<1x128xi32>
    %262 = vector.broadcast %219 : f32 to vector<1x128xf32>
    %263 = arith.select %261, %262, %259 : vector<1x128xi1>, vector<1x128xf32>
    %c4_i32 = arith.constant 4 : i32
    %264 = vector.broadcast %c4_i32 : i32 to vector<1x128xi32>
    %265 = arith.cmpi eq, %246, %264 : vector<1x128xi32>
    %266 = vector.broadcast %245 : f32 to vector<1x128xf32>
    %267 = arith.select %265, %266, %263 : vector<1x128xi1>, vector<1x128xf32>
    %c0_55 = arith.constant 0 : index
    %c0_56 = arith.constant 0 : index
    %268 = vector.load %arg2[%c0_55, %c0_56] : memref<1x128xf32, #tpu.memory_space<vmem>>, vector<1x128xf32>
    tpu.vector_store %arg2[%c0_55, %c0_56], %267 {strides = array<i32>} : memref<1x128xf32, #tpu.memory_space<vmem>>, vector<1x128xf32>,
    return
  }
}

</mosaic_0001>

<bundles_post_ra>
// kernel: tpu_custom_call.1
= control target key start
LH: loop header
LB: loop body
LE: loop exit
PB: predicated region body
PF: predicated region fallthrough
CT: control target
= control target key end

     0   :  { %7 = vsyncpa [#allocation3], 0  ;;  %s740_s0 = inlined_call_operand.hbm [shape: f32[4,128], index: 0, kind: input, shape index: {}]   ;;  %s741_s1 = inlined_call_operand.hbm [shape: f32[16,128], index: 1, kind: input, shape index: {}]   ;;  %s742_s2 = inlined_call_operand.hbm [shape: f32[1,128], index: 2, kind: output, shape index: {}]  }
   0x1   :  { %8 = vsyncpa [#allocation6], 0 }
   0x2   :  { %9 = vsyncpa [#allocation4], 0  ;;  %s15_s11 = sshll.u32 %s740_s0, 4  ;;  %s611_s12 = smov [#allocation2]   ;;  %s16_s11 = int_to_ptr.hbm [resolvable:$true] %s15_s11 }
   0x3   :  { %s17_s13 = sshll.u32 %s611_s12, 4  ;;  %s25_s16 = sshll.u32 %s741_s1, 4  ;;  %s18_s13 = int_to_ptr.vmem [resolvable:$true] %s17_s13  ;;  %s26_s16 = int_to_ptr.hbm [resolvable:$true] %s25_s16 }
   0x4   :  { %20 = dma.hbm_to_vmem [thread:$0]  %s16_s11, 64, %s18_s13, [#allocation3]  }
   0x5   :  { %s612_s17 = smov [#allocation5]   ;;  %s613_s19 = smov 128  }
   0x6   :  { %s27_s18 = sshll.u32 %s612_s17, 4  ;;  %s614_s20 = smov 8   ;;  %s28_s18 = int_to_ptr.vmem [resolvable:$true] %s27_s18 }
   0x7   :  { %33 = dma.hbm_to_vmem [thread:$0]  %s26_s16, 256, %s28_s18, [#allocation6], %s613_s19, %s613_s19, %s614_s20  }
   0x8   :  { %605 = dma.done.wait [#allocation3], 64  }
   0x9   :  { %606 = vsyncadd [#allocation3], 4294967232 }
   0xa   :  { %607 = dma.done.wait [#allocation6], 256  }
   0xb   :  { %608 = vsyncadd [#allocation6], 4294967040  ;;  %v42_v0 = vld [vmem:[#allocation2] sm:$0xf]  ;;  %v642_v18 = vld [vmem:[#allocation5 + $0x8] sm:$0xff]  ;;  %vm107_vm1 = vcmask 1040384  }
   0xc   :  { %v46_v1 = vrot.slane %v42_v0, 1  ;;  %v49_v2 = vrot.slane %v42_v0, 2  ;;  %v52_v4 = vrot.slane %v42_v0, 3  ;;  %v644_v20 = vld [vmem:[#allocation5] sm:$0xff]  ;;  %v147_v24 = vrot.slane %v642_v18, 4  ;;  %s619_s25 = smov 1.0  }
   0xd   :  { %vm89_vm0 = vcmp.eq.f32.partialorder %v644_v20, 0.0  ;;  %v615_v31 = vmov 0.0   ;;  %vm92_vm2 = vcmp.eq.f32.partialorder %v644_v20, 1.0  ;;  %vm95_vm3 = vcmp.eq.f32.partialorder %v644_v20, 2.0  ;;  %s618_s21 = smov 1e-12  }
   0xe   :  { %v48_v3 = vmax.f32 %v42_v0, %v46_v1  ;;  %v149_v29 = vsel %vm107_vm1, %v147_v24, 0.0  ;;  %v91_v32 = vsel %vm89_vm0, 0.1, %v615_v31  ;;  %v90_v34 = vsel %vm89_vm0, %v42_v0, 0.0  ;;  %s620_s12 = smov [#allocation7]   ;;  %s462_s17 = sshll.u32 %s742_s2, 4  ;;  %s463_s17 = int_to_ptr.hbm [resolvable:$true] %s462_s17 }
   0xf   :  { %150 = vadd.xlane.f32.xlu1 %v149_v29  ;;  %v94_v35 = vsel %vm92_vm2, 1.0, %v91_v32  ;;  %v93_v36 = vsel %vm92_vm2, %v46_v1, %v90_v34  ;;  %vm98_vm4 = vcmp.eq.f32.partialorder %v644_v20, 3.0  ;;  %v102_v39 = vrot.slane %v644_v20, 1  ;;  %s460_s13 = sshll.u32 %s620_s12, 4  ;;  %s461_s13 = int_to_ptr.vmem [resolvable:$true] %s460_s13 }
  0x10   :  { %v51_v5 = vmax.f32 %v48_v3, %v49_v2  ;;  %v97_v37 = vsel %vm95_vm3, 1.0, %v94_v35  ;;  %v96_v38 = vsel %vm95_vm3, %v49_v2, %v93_v36  ;;  %v658_v50 = vrot.slane %v642_v18, 2 }
  0x11   :  { %v100_v41 = vsel %vm98_vm4, 1.0, %v97_v37  ;;  %v99_v43 = vsel %vm98_vm4, %v52_v4, %v96_v38  ;;  %v211_v51 = vrot.slane %v644_v20, 2  ;;  %v616_v52 = vmov 0  }
  0x12   :  { %v54_v6 = vmax.f32 %v51_v5, %v52_v4  ;;  %v104_v45 = vmul.f32 %v102_v39, %v100_v41  ;;  %vm236_vm5 = vcmp.gt.f32.partialorder %v644_v20, %v658_v50  ;;  %v218_v56 = vmax.f32 %v644_v20, 0.0 }
  0x13   :  { %vm213_vm6 = vcmp.gt.f32.partialorder %v644_v20, %v211_v51  ;;  %v237_v53 = vsel %vm236_vm5, 1, %v616_v52  ;;  %v668_v59 = vmax.f32 %v642_v18, 0.0  ;;  %v229_v3 = vrot.slane %v644_v20, 3 }
  0x14   :  { %v55_v7 = vsub.f32 %v42_v0, %v54_v6  ;;  %v59_v8 = vrot.slane %v54_v6, 7  ;;  %v68_v9 = vrot.slane %v54_v6, 6  ;;  %v77_v10 = vrot.slane %v54_v6, 5 }
  0x15   :  { %v118_v49 = vsel %vm107_vm1, %v104_v45, 0.0  ;;  %v214_v54 = vsel %vm213_vm6, 1, %v616_v52  ;;  %v238_v55 = vrot.slane %v237_v53, 1  ;;  %v221_v58 = vrot.slane %v218_v56, 1 }
  0x16   :  { %v56_v11 = vmul.f32 1.442695, %v55_v7  ;;  %v61_v12 = vsub.f32 %v42_v0, %v59_v8  ;;  %v70_v13 = vsub.f32 %v42_v0, %v68_v9  ;;  %v79_v14 = vsub.f32 %v42_v0, %v77_v10 }
  0x17   :  { %v215_v57 = vrot.slane %v214_v54, 1  ;;  %vm239_vm7 = vcmp.ne.s32.totalorder %v238_v55, 0  ;;  %v248_v63 = vrot.slane %v668_v59, 3  ;;  %v250_v0 = vrot.slane %v642_v18, 3 }
  0x18   :  { %v62_v15 = vmul.f32 1.442695, %v61_v12  ;;  %v71_v16 = vmul.f32 1.442695, %v70_v13  ;;  %v80_v17 = vmul.f32 1.442695, %v79_v14  ;;  %507 = vpow2.f32 %v56_v11  ;;  %vm670_vm9 = vmor %vm236_vm5, %vm239_vm7 }
  0x19   :  { %vm216_vm8 = vcmp.ne.s32.totalorder %v215_v57, 0  ;;  %v242_v62 = vsel %vm670_vm9, %v221_v58, %v102_v39  ;;  %v227_v2 = vrot.slane %v218_v56, 3  ;;  %v252_v5 = vsel %vm670_vm9, %v248_v63, %v250_v0 }
  0x1a   :  { %509 = vpow2.f32 %v62_v15  ;;  %vm674_vm10 = vmor %vm213_vm6, %vm216_vm8  ;;  %v255_v4 = vadd.f32 1e-06, %v242_v62  ;;  %v241_v7 = vsel %vm670_vm9, %v218_v56, %v644_v20  ;;  %v245_v8 = vrot.slane %v668_v59, 2 }
  0x1b   :  { %511 = vpow2.f32 %v71_v16  ;;  %v223_v1 = vsel %vm674_vm10, %v221_v58, %v102_v39  ;;  %v231_v9 = vsel %vm674_vm10, %v227_v2, %v229_v3  ;;  %v253_v11 = vadd.f32 1e-06, %v241_v7 }
  0x1c   :  { %513 = vpow2.f32 %v80_v17  ;;  %v256_v10 = vmax.f32 %v252_v5, %v255_v4  ;;  %v219_v12 = vsel %vm674_vm10, %v218_v56, %v644_v20  ;;  %v224_v13 = vrot.slane %v218_v56, 2 }
  0x1d   :  { %v247_v14 = vsel %vm670_vm9, %v245_v8, %v658_v50  ;;  %v268_v15 = vrot.slane %v242_v62, 4  ;;  %v232_v16 = vadd.f32 1e-06, %v219_v12  ;;  %v339_v54 = vand.u32 2147483647, %v642_v18 }
  0x1e   :  { %v508_v19 = vpop.eup %507  ;;  %v254_v17 = vmax.f32 %v247_v14, %v253_v11  ;;  %v168_v0 = vsub.f32 %v644_v20, %v147_v24  ;;  %v160_v5 = vrot.slane %v644_v20, 4  ;;  %vm352_vm11 = vcmp.lt.f32.partialorder %v642_v18, 0.0 }
  0x1f   :  { %v270_v31 = vmax.f32 %v223_v1, %v268_v15  ;;  %v293_v39 = vmin.f32 %v223_v1, %v268_v15  ;;  %v340_v57 = vsub.f32 0.0, %v339_v54  ;;  %v353_v24 = vsel %vm352_vm11, 1, %v616_v52 }
  0x20   :  { %v510_v21 = vpop.eup %509  ;;  %v260_v29 = vsub.f32 %v254_v17, %v241_v7  ;;  %vm351_vm12 = vcmp.eq.f32.partialorder %v642_v18, 1.0 }
  0x21   :  { %v512_v22 = vpop.eup %511  ;;  %v65_v23 = vrot.slane %v510_v21, 1  ;;  %v261_v21 = vsub.f32 %v256_v10, %v242_v62  ;;  %v341_v61 = vmul.f32 1.442695, %v340_v57 }
  0x22   :  { %v514_v25 = vpop.eup %513  ;;  %v74_v26 = vrot.slane %v512_v22, 2  ;;  %v226_v22 = vsel %vm674_vm10, %v224_v13, %v211_v51  ;;  %v354_v13 = vrot.slane %v353_v24, 7 }
  0x23   :  { %v67_v27 = vadd.f32 %v508_v19, %v65_v23  ;;  %v83_v28 = vrot.slane %v514_v25, 3  ;;  %v233_v23 = vmax.f32 %v226_v22, %v232_v16  ;;  %v264_v25 = vrot.slane %v241_v7, 4 }
  0x24   :  { %v262_v35 = vmul.f32 %v261_v21, %v260_v29  ;;  %v169_v7 = vand.u32 2147483647, %v168_v0  ;;  %vm355_vm13 = vcmp.ne.s32.totalorder %v354_v13, 0 }
  0x25   :  { %v76_v30 = vadd.f32 %v74_v26, %v67_v27  ;;  %v272_v26 = vrot.slane %v254_v17, 4  ;;  %v276_v27 = vrot.slane %v256_v10, 4  ;;  %v257_v34 = vsub.f32 %v233_v23, %v219_v12  ;;  %vm356_vm14 = vmand %vm351_vm12, %vm355_vm13 }
  0x26   :  { %v292_v37 = vmin.f32 %v219_v12, %v264_v25  ;;  %v171_v14 = vrot.slane %v169_v7, 2 }
  0x27   :  { %v85_v33 = vadd.f32 %v83_v28, %v76_v30  ;;  %v266_v30 = vmax.f32 %v219_v12, %v264_v25  ;;  %v274_v32 = vmin.f32 %v233_v23, %v272_v26  ;;  %v343_v12 = vrot.slane %v642_v18, 1 }
  0x28   :  { %v617_v25 = vmov 1.0  }
  0x29   :  { %515 = vlog2.f32 %v85_v33  ;;  %v279_v36 = vsub.f32 %v274_v32, %v266_v30  ;;  %v345_v17 = vmul.f32 %v343_v12, %v642_v18 }
  0x2b   :  { %v346_v22 = vsub.f32 %v668_v59, %v345_v17 }
  0x2f   :  { %v516_v40 = vpop.eup %515 }
  0x30   :  { %v87_v42 = vmul.f32 0.6931472, %v516_v40  ;;  %v294_v40 = vmax.f32 %v233_v23, %v272_v26  ;;  %v357_v26 = vsel %vm356_vm14, 10.0, %v617_v25 }
  0x31   :  { %v359_v29 = vrot.slane %v357_v26, 1 }
  0x32   :  { %v88_v44 = vadd.f32 %v87_v42, %v54_v6  ;;  %v234_v6 = vadd.f32 1e-06, %v223_v1 }
  0x34   :  { %v105_v46 = vsub.f32 %v88_v44, %v99_v43  ;;  %v235_v19 = vmax.f32 %v231_v9, %v234_v6  ;;  %v280_v43 = vmax.f32 %v279_v36, 0.0  ;;  %v285_v44 = vrot.slane %v262_v35, 4 }
  0x35   :  { %v162_v9 = vsub.f32 %v644_v20, %v160_v5 }
  0x36   :  { %v106_v47 = vmul.f32 %v105_v46, %v104_v45  ;;  %v258_v28 = vsub.f32 %v235_v19, %v223_v1  ;;  %v278_v33 = vmin.f32 %v235_v19, %v276_v27  ;;  %v295_v41 = vmax.f32 %v235_v19, %v276_v27 }
  0x37   :  { %v296_v46 = vsub.f32 %v294_v40, %v292_v37  ;;  %v163_v11 = vand.u32 2147483647, %v162_v9  ;;  %v174_v19 = vrot.slane %v169_v7, 3 }
  0x38   :  { %v108_v48 = vsel %vm107_vm1, %v106_v47, 0.0  ;;  %v281_v38 = vsub.f32 %v278_v33, %v270_v31  ;;  %v259_v42 = vmul.f32 %v258_v28, %v257_v34  ;;  %v298_v47 = vsub.f32 %v295_v41, %v293_v39 }
  0x39   :  { %109 = vadd.xlane.f32.xlu0 %v108_v48  ;;  %v297_v51 = vmax.f32 %v296_v46, 0.0  ;;  %v165_v16 = vrot.slane %v163_v11, 1  ;;  %v393_v33 = vrot.slane %v642_v18, 7 }
  0x3a   :  { %v282_v45 = vmax.f32 %v281_v38, 0.0  ;;  %v287_v48 = vadd.f32 %v285_v44, %v259_v42  ;;  %v299_v53 = vmax.f32 %v298_v47, 0.0 }
  0x3b   :  { %v167_v21 = vadd.f32 %v165_v16, %v163_v11  ;;  %v395_v59 = vsel %vm107_vm1, %v393_v33, 0.0 }
  0x3c   :  { %v300_v56 = vmul.f32 %v299_v53, %v297_v51 }
  0x3d   :  { %v173_v27 = vadd.f32 %v171_v14, %v167_v21 }
  0x3e   :  { %v302_v60 = vadd.f32 1e-07, %v300_v56 }
  0x3f   :  { %v176_v31 = vadd.f32 %v174_v19, %v173_v27 }
  0x41   :  { %119 = vadd.xlane.f32.xlu0 %v118_v49  ;;  %v283_v49 = vmul.f32 %v282_v45, %v280_v43  ;;  %v179_v34 = vmul.f32 %v658_v50, %v176_v31 }
  0x43   :  { %v288_v55 = vsub.f32 %v287_v48, %v283_v49  ;;  %v181_v36 = vrot.slane %v179_v34, 2 }
  0x45   :  { %v289_v58 = vadd.f32 1e-07, %v288_v55  ;;  %v301_v62 = vsub.f32 %v300_v56, %v288_v55  ;;  %v183_v38 = vsel %vm107_vm1, %v181_v36, 0.0 }
  0x46   :  { %184 = vadd.xlane.f32.xlu1 %v183_v38 }
  0x47   :  { %517 = vrcp.f32 %v289_v58 }
  0x48   :  { %519 = vrcp.f32 %v302_v60 }
  0x49   :  { %521 = vpow2.f32 %v341_v61  ;;  %396 = vadd.xlane.f32.xlu0 %v395_v59 }
  0x4d   :  { %v518_v63 = vpop.eup %517 }
  0x4e   :  { %v520_v1 = vpop.eup %519  ;;  %v291_v2 = vmul.f32 %v518_v63, %v283_v49 }
  0x4f   :  { %v522_v3 = vpop.eup %521  ;;  %v304_v4 = vmul.f32 %v520_v1, %v301_v62 }
  0x50   :  { %v347_v6 = vadd.f32 1.0, %v522_v3 }
  0x51   :  { %v305_v8 = vsub.f32 %v291_v2, %v304_v4 }
  0x52   :  { %523 = vlog2.f32 %v347_v6 }
  0x53   :  { %v306_v10 = vsub.f32 1.0, %v305_v8 }
  0x55   :  { %v307_v15 = vmax.f32 %v306_v10, 0.0 }
  0x57   :  { %v308_v20 = vmul.f32 %v307_v15, %v658_v50 }
  0x58   :  { %v524_v23 = vpop.eup %523 }
  0x59   :  { %v310_v52 = vrot.slane %v308_v20, 2  ;;  %v349_v28 = vmul.f32 0.6931472, %v524_v23 }
  0x5b   :  { %v312_v30 = vsel %vm107_vm1, %v310_v52, 0.0  ;;  %v350_v32 = vadd.f32 %v349_v28, %v346_v22 }
  0x5c   :  { %313 = vadd.xlane.f32.xlu2 %v312_v30 }
  0x5d   :  { %v361_v35 = vmul.f32 %v359_v29, %v350_v32  ;;  %v406_v56 = vmul.f32 %v350_v32, %v658_v50 }
  0x5f   :  { %v362_v37 = vmul.f32 %v361_v35, %v658_v50  ;;  %v408_v57 = vrot.slane %v406_v56, 5 }
  0x61   :  { %v364_v39 = vrot.slane %v362_v37, 2  ;;  %v410_v58 = vsel %vm107_vm1, %v408_v57, 0.0 }
  0x62   :  { %411 = vadd.xlane.f32.xlu1 %v410_v58 }
  0x63   :  { %v366_v40 = vsel %vm107_vm1, %v364_v39, 0.0 }
  0x64   :  { %367 = vadd.xlane.f32.xlu2 %v366_v40 }
  0x82   :  { %v151_v60 = vpop.xlane.xlu1 %150 }
  0x83   :  { %v152_v61 = vrot.slane %v151_v60, 4 }
  0x85   :  { %v153_v63 = vadd.f32 %v152_v61, %v151_v60 }
  0x87   :  { %v154_v0 = vrot.slane %v153_v63, 2 }
  0x89   :  { %v155_v3 = vadd.f32 %v154_v0, %v153_v63 }
  0x8b   :  { %v156_v7 = vrot.slane %v155_v3, 1 }
  0x8d   :  { %v157_v12 = vadd.f32 %v156_v7, %v155_v3  ;;  %v437_v7 = vlaneseq }
  0xac   :  { %v110_v41 = vpop.xlane.xlu0 %109 }
  0xad   :  { %v111_v42 = vrot.slane %v110_v41, 4 }
  0xaf   :  { %v112_v43 = vadd.f32 %v111_v42, %v110_v41 }
  0xb1   :  { %v113_v18 = vrot.slane %v112_v43, 2 }
  0xb3   :  { %v114_v44 = vadd.f32 %v113_v18, %v112_v43 }
  0xb4   :  { %v120_v45 = vpop.xlane.xlu0 %119 }
  0xb5   :  { %v121_v46 = vrot.slane %v120_v45, 4  ;;  %v115_v47 = vrot.slane %v114_v44, 1 }
  0xb7   :  { %v122_v48 = vadd.f32 %v121_v46, %v120_v45  ;;  %v116_v49 = vadd.f32 %v115_v47, %v114_v44 }
  0xb9   :  { %v123_v51 = vrot.slane %v122_v48, 2  ;;  %473 = vpush %v116_v49  ;;  %v185_v24 = vpop.xlane.xlu1 %184 }
  0xba   :  { %v186_v13 = vrot.slane %v185_v24, 4 }
  0xbb   :  { %v124_v53 = vadd.f32 %v123_v51, %v122_v48 }
  0xbc   :  { %v187_v14 = vadd.f32 %v186_v13, %v185_v24  ;;  %v397_v22 = vpop.xlane.xlu0 %396 }
  0xbd   :  { %v125_v54 = vrot.slane %v124_v53, 1  ;;  %v398_v52 = vrot.slane %v397_v22, 4 }
  0xbe   :  { %v188_v15 = vrot.slane %v187_v14, 2 }
  0xbf   :  { %v126_v55 = vadd.f32 %v125_v54, %v124_v53  ;;  %v399_v30 = vadd.f32 %v398_v52, %v397_v22 }
  0xc0   :  { %v189_v16 = vadd.f32 %v188_v15, %v187_v14 }
  0xc1   :  { %475 = vpush %v126_v55  ;;  %v400_v59 = vrot.slane %v399_v30, 2 }
  0xc2   :  { %v190_v17 = vrot.slane %v189_v16, 1 }
  0xc3   :  { %v401_v42 = vadd.f32 %v400_v59, %v399_v30 }
  0xc4   :  { %v191_v19 = vadd.f32 %v190_v17, %v189_v16 }
  0xc5   :  { %v402_v57 = vrot.slane %v401_v42, 1 }
  0xc7   :  { %v403_v0 = vadd.f32 %v402_v57, %v401_v42 }
  0xcf   :  { %v314_v20 = vpop.xlane.xlu2 %313 }
  0xd0   :  { %v315_v23 = vrot.slane %v314_v20, 4 }
  0xd2   :  { %v316_v28 = vadd.f32 %v315_v23, %v314_v20 }
  0xd4   :  { %v317_v32 = vrot.slane %v316_v28, 2 }
  0xd6   :  { %v318_v38 = vadd.f32 %v317_v32, %v316_v28 }
  0xd7   :  { %v368_v21 = vpop.xlane.xlu2 %367 }
  0xd8   :  { %v369_v26 = vrot.slane %v368_v21, 4  ;;  %v319_v46 = vrot.slane %v318_v38, 1 }
  0xda   :  { %v370_v29 = vadd.f32 %v369_v26, %v368_v21  ;;  %v320_v60 = vadd.f32 %v319_v46, %v318_v38 }
  0xdc   :  { %v371_v35 = vrot.slane %v370_v29, 2 }
  0xde   :  { %v372_v41 = vadd.f32 %v371_v35, %v370_v29 }
  0xe0   :  { %v373_v54 = vrot.slane %v372_v41, 1 }
  0xe2   :  { %v374_v63 = vadd.f32 %v373_v54, %v372_v41 }
  0xea   :  { %s723_s0 = spop %473 }
  0xf2   :  { %s476_s1 = spop %475 }
  0xf3   :  { %s128_s22 = smax.f32 %s618_s21, %s476_s1 }
  0xf4   :  { %v129_v62 = vstv %s128_s22 }
  0xf5   :  { %525 = vrcp.f32 %v129_v62  ;;  %v141_v50 = vand.u32 2147483648, %v129_v62  ;;  %v139_v6 = vand.u32 2147483647, %v129_v62  ;;  %vm135_vm0 = vweird.f32 %v129_v62 }
  0xf7   :  { %v142_v9 = vor.u32 1.1754944e-38, %v141_v50  ;;  %vm140_vm2 = vcmp.eq.f32.partialorder %v139_v6, 8.507059e+37 }
  0xfb   :  { %v526_v1 = vpop.eup %525 }
  0xfc   :  { %v131_v2 = vmul.f32 %v526_v1, %v129_v62  ;;  %vm136_vm15 = vweird.f32 %v526_v1 }
  0xfd   :  { %vm137_vm1 = vmor %vm135_vm0, %vm136_vm15 }
  0xfe   :  { %v132_v4 = vsub.f32 1.0, %v131_v2 }
 0x100   :  { %v133_v5 = vmul.f32 %v526_v1, %v132_v4 }
 0x102   :  { %v134_v8 = vadd.f32 %v526_v1, %v133_v5 }
 0x104   :  { %v138_v10 = vsel %vm137_vm1, %v526_v1, %v134_v8  ;;  %v412_v1 = vpop.xlane.xlu1 %411  ;;  %v438_v8 = vand.u32 127, %v437_v7 }
 0x105   :  { %v143_v11 = vsel %vm140_vm2, %v142_v9, %v138_v10  ;;  %v413_v2 = vrot.slane %v412_v1, 4 }
 0x106   :  { %477 = vpush %v143_v11  ;;  %vm439_vm11 = vcmp.eq.s32.totalorder %v438_v8, 0  ;;  %vm442_vm12 = vcmp.eq.s32.totalorder %v438_v8, 1  ;;  %vm445_vm13 = vcmp.eq.s32.totalorder %v438_v8, 2  ;;  %vm448_vm14 = vcmp.eq.s32.totalorder %v438_v8, 3 }
 0x107   :  { %479 = vpush %v157_v12  ;;  %v414_v3 = vadd.f32 %v413_v2, %v412_v1 }
 0x108   :  { %481 = vpush %v191_v19 }
 0x109   :  { %v415_v4 = vrot.slane %v414_v3, 2 }
 0x10b   :  { %v416_v50 = vadd.f32 %v415_v4, %v414_v3 }
 0x10d   :  { %v417_v5 = vrot.slane %v416_v50, 1 }
 0x10f   :  { %v418_v6 = vadd.f32 %v417_v5, %v416_v50 }
 0x137   :  { %s725_s23 = spop %477 }
 0x138   :  { %s480_s24 = spop %479  ;;  %s145_s28 = smul.f32 %s725_s23, %s723_s0 }
 0x139   :  { %s159_s26 = smax.f32 %s619_s25, %s480_s24  ;;  %s482_s29 = spop %481 }
 0x13a   :  { %s193_s27 = smul.f32 4.0, %s159_s26  ;;  %v322_v25 = vstv %s159_s26  ;;  %v440_v9 = vstv %s145_s28 }
 0x13b   :  { %527 = vrcp.f32 %v322_v25  ;;  %vm328_vm5 = vweird.f32 %v322_v25  ;;  %v334_v47 = vand.u32 2147483648, %v322_v25  ;;  %v332_v51 = vand.u32 2147483647, %v322_v25 }
 0x13c   :  { %v194_v27 = vstv %s193_s27  ;;  %v441_v10 = vsel %vm439_vm11, %v440_v9, 0.0 }
 0x13d   :  { %529 = vrcp.f32 %v194_v27  ;;  %v206_v43 = vand.u32 2147483648, %v194_v27  ;;  %v204_v44 = vand.u32 2147483647, %v194_v27  ;;  %vm200_vm6 = vweird.f32 %v194_v27 }
 0x13e   :  { %v335_v61 = vor.u32 1.1754944e-38, %v334_v47  ;;  %vm333_vm10 = vcmp.eq.f32.partialorder %v332_v51, 8.507059e+37 }
 0x13f   :  { %v207_v53 = vor.u32 1.1754944e-38, %v206_v43  ;;  %vm205_vm9 = vcmp.eq.f32.partialorder %v204_v44, 8.507059e+37 }
 0x141   :  { %v528_v31 = vpop.eup %527 }
 0x142   :  { %v324_v33 = vmul.f32 %v528_v31, %v322_v25  ;;  %vm329_vm3 = vweird.f32 %v528_v31 }
 0x143   :  { %v530_v34 = vpop.eup %529  ;;  %vm728_vm7 = vmor %vm328_vm5, %vm329_vm3  ;;  %vm451_vm3 = vcmp.eq.s32.totalorder %v438_v8, 4 }
 0x144   :  { %v196_v36 = vmul.f32 %v530_v34, %v194_v27  ;;  %v325_v37 = vsub.f32 1.0, %v324_v33  ;;  %vm201_vm4 = vweird.f32 %v530_v34 }
 0x145   :  { %vm202_vm8 = vmor %vm200_vm6, %vm201_vm4 }
 0x146   :  { %v197_v39 = vsub.f32 1.0, %v196_v36  ;;  %v326_v40 = vmul.f32 %v528_v31, %v325_v37 }
 0x148   :  { %v198_v18 = vmul.f32 %v530_v34, %v197_v39  ;;  %v327_v45 = vadd.f32 %v528_v31, %v326_v40 }
 0x14a   :  { %v199_v48 = vadd.f32 %v530_v34, %v198_v18  ;;  %v331_v56 = vsel %vm728_vm7, %v528_v31, %v327_v45 }
 0x14b   :  { %v336_v62 = vsel %vm333_vm10, %v335_v61, %v331_v56 }
 0x14c   :  { %v203_v55 = vsel %vm202_vm8, %v530_v34, %v199_v48 }
 0x14d   :  { %v208_v58 = vsel %vm205_vm9, %v207_v53, %v203_v55 }
 0x14e   :  { %483 = vpush %v208_v58 }
 0x14f   :  { %485 = vpush %v320_v60 }
 0x150   :  { %487 = vpush %v336_v62 }
 0x151   :  { %489 = vpush %v374_v63 }
 0x152   :  { %491 = vpush %v403_v0 }
 0x153   :  { %493 = vpush %v418_v6 }
 0x17f   :  { %s484_s30 = spop %483 }
 0x180   :  { %s210_s3 = smul.f32 %s484_s30, %s482_s29  ;;  %s486_s4 = spop %485 }
 0x181   :  { %s488_s5 = spop %487 }
 0x182   :  { %v443_v11 = vstv %s210_s3  ;;  %s338_s6 = smul.f32 %s488_s5, %s486_s4  ;;  %s490_s7 = spop %489 }
 0x183   :  { %v444_v12 = vsel %vm442_vm12, %v443_v11, %v441_v10  ;;  %s392_s8 = smul.f32 %s490_s7, %s488_s5  ;;  %s492_s9 = spop %491 }
 0x184   :  { %v446_v24 = vstv %s338_s6  ;;  %s405_s10 = smax.f32 %s619_s25, %s492_s9  ;;  %s494_s11 = spop %493 }
 0x185   :  { %v447_v13 = vsel %vm445_vm13, %v446_v24, %v444_v12  ;;  %v449_v14 = vstv %s392_s8  ;;  %v420_v15 = vstv %s405_s10 }
 0x186   :  { %v450_v16 = vsel %vm448_vm14, %v449_v14, %v447_v13  ;;  %531 = vrcp.f32 %v420_v15  ;;  %v432_v21 = vand.u32 2147483648, %v420_v15  ;;  %v430_v23 = vand.u32 2147483647, %v420_v15 }
 0x187   :  { %vm426_vm0 = vweird.f32 %v420_v15 }
 0x188   :  { %v433_v26 = vor.u32 1.1754944e-38, %v432_v21  ;;  %vm431_vm2 = vcmp.eq.f32.partialorder %v430_v23, 8.507059e+37 }
 0x18c   :  { %v532_v17 = vpop.eup %531 }
 0x18d   :  { %v422_v19 = vmul.f32 %v532_v17, %v420_v15  ;;  %vm427_vm15 = vweird.f32 %v532_v17 }
 0x18e   :  { %vm428_vm1 = vmor %vm426_vm0, %vm427_vm15 }
 0x18f   :  { %v423_v20 = vsub.f32 1.0, %v422_v19 }
 0x191   :  { %v424_v22 = vmul.f32 %v532_v17, %v423_v20 }
 0x193   :  { %v425_v25 = vadd.f32 %v532_v17, %v424_v22 }
 0x195   :  { %v429_v52 = vsel %vm428_vm1, %v532_v17, %v425_v25 }
 0x196   :  { %v434_v27 = vsel %vm431_vm2, %v433_v26, %v429_v52 }
 0x197   :  { %495 = vpush %v434_v27 }
 0x1c8   :  { %s496_s14 = spop %495 }
 0x1c9   :  { %s436_s18 = smul.f32 %s496_s14, %s494_s11 }
 0x1cb   :  { %v452_v28 = vstv %s436_s18 }
 0x1cc   :  { %v453_v29 = vsel %vm451_vm3, %v452_v28, %v450_v16 }
 0x1cd   :  { %454 = vst [vmem:[#allocation7] sm:$0x1] %v453_v29 }
 0x1ce   :  { %465 = dma.vmem_to_hbm [thread:$0]  %s461_s13, 16, %s463_s17, [#allocation4]  }
 0x1cf   :  { %609 = dma.done.wait [#allocation4], 16  }
 0x1d0   :  { %610 = vsyncadd [#allocation4], 4294967280 }
 0x1d1   :  { %470 = vsyncpa [#allocation3], 1 }
 0x1d2   :  { %471 = vsyncpa [#allocation6], 1 }
 0x1d3   :  { %472 = vsyncpa [#allocation4], 1 }

</bundles_post_ra>
